<compile_context>
chip_gen: v5e
topology: v5e:2x2
jax: 0.10.0
libtpu: 0.0.40
codegen_flags: <defaults>
</compile_context>

<pallas_src>
import jax
import jax.numpy as jnp
import numpy as np
from jax import lax
from jax.experimental import pallas as pl
from jax.experimental.pallas import tpu as pltpu

EPS = 1e-5


def _toeplitz_weight(w, W, dtype):
    """w: (3, 3, Ci, Co) -> (3, W*Ci, W*Co) width-Toeplitz blocks (one per kh).

    block[kh][j*Ci + ci, x*Co + co] = w[kh, j - x + 1, ci, co] if 0 <= j-x+1 <= 2 else 0
    so a row-slab matmul implements the width dimension of the 3x3 conv (zero padding
    in width is implicit: out-of-range taps simply have no matching row).
    """
    _, KW, Ci, Co = w.shape
    j_idx = jnp.arange(W)[:, None]
    x_idx = jnp.arange(W)[None, :]
    blocks = []
    for kh in range(3):
        blk = jnp.zeros((W, Ci, W, Co), dtype)
        for kw in range(KW):
            m = (j_idx - x_idx + 1 == kw).astype(dtype)          # (W, W) band mask
            blk = blk + m[:, None, :, None] * w[kh, kw][None, :, None, :]
        blocks.append(blk.reshape(W * Ci, W * Co))
    return jnp.stack(blocks, axis=0)


def basic_block_forward(x_nchw, params):
    """x_nchw: (N, Cin, H, W) float32 -> (N, Cout, H, W) float32 (training-mode BN)."""
    w1, g1, b1, w2, g2, b2, wsc, gsc, bsc = params
    N, Cin, H, W = x_nchw.shape
    Cmid, Cout = w1.shape[-1], w2.shape[-1]
    assert Cmid == Cout, "BasicBlock has nf == nf * expansion"
    assert W & (W - 1) == 0, "lane roll-add BN fold assumes power-of-two W"
    NH, WCm, WCo = N * H, W * Cmid, W * Cout
    dt = jnp.float32
    inv_cnt = 1.0 / float(N * H * W)
    n_fold = int(np.log2(W))                                     # stride-C roll-add steps

    # ---- wrapper-side layout prep (plain XLA, one-time) ---------------------
    x = jnp.transpose(x_nchw, (0, 2, 3, 1)).astype(dt)           # NCHW -> NHWC
    x_rows = x.reshape(N, H, W * Cin)                            # dense rows
    x_rows_p = jnp.pad(x_rows, ((0, 0), (1, 1), (0, 0)))         # height pad only
    # LHS for conv1: 3 height-shifted slabs side by side -> (N*H, 3*W*Cin)
    a1 = jnp.concatenate([x_rows_p[:, kh:kh + H, :] for kh in range(3)],
                         axis=-1).reshape(NH, 3 * W * Cin)

    # conv1 weights as width-Toeplitz blocks, flattened over kh -> (3*W*Cin, W*Cmid)
    b1_conv = _toeplitz_weight(w1, W, dt).reshape(3 * W * Cin, WCm)
    # 1x1 shortcut rides along as extra output columns of the same matmul: it only
    # reads the center (kh == 1) slab with j == x.
    eye_w = jnp.eye(W, dtype=dt)
    sc_blk = (eye_w[:, None, :, None] * wsc[None, :, None, :]).reshape(W * Cin, WCo)
    b1_sc = jnp.concatenate([jnp.zeros_like(sc_blk), sc_blk, jnp.zeros_like(sc_blk)],
                            axis=0)                              # (3*W*Cin, W*Cout)
    b1_full = jnp.concatenate([b1_conv, b1_sc], axis=1)          # (3*W*Cin, 2*W*Cout)

    # conv2 weights: all three kh Toeplitz blocks stacked -> (3*W*Cmid, W*Cout)
    b2_full = _toeplitz_weight(w2, W, dt).reshape(3 * WCm, WCo)

    # bf16 MXU operands (f32 accumulation happens inside the MXU)
    a1_bf = a1.astype(jnp.bfloat16)
    b1_bf = b1_full.astype(jnp.bfloat16)
    b2_bf = b2_full.astype(jnp.bfloat16)

    # per-channel BN params tiled to dense columns and packed into ONE (8, W*C) slab:
    # rows = [g1, b1, g2, b2, gsc, bsc, 0, 0]
    def tile_row(v):
        return jnp.tile(v.reshape(1, -1), (1, W))
    bn_rows = jnp.concatenate(
        [tile_row(g1), tile_row(b1), tile_row(g2), tile_row(b2),
         tile_row(gsc), tile_row(bsc), jnp.zeros((2, WCo), dt)], axis=0)   # (8, W*Cout)

    # ---- fused kernel -------------------------------------------------------
    def kernel(a1_ref, b1_ref, b2_ref, bnp_ref, out_ref):
        bnp = bnp_ref[...]                                       # (8, W*C) f32

        def fold(v):
            # Per-channel batch sum broadcast to every width position: lane j = x*C + c
            # accumulates all x' for channel c via log2(W) cyclic stride-C roll-adds
            # (XLU slot, keeps the MXU free).  Works row-wise on stacked stats.
            for k in range(n_fold):
                v = v + pltpu.roll(v, shift=Cout * (1 << k), axis=1)
            return v

        # conv1 (3x3, pad=1) + 1x1 shortcut in a single bf16 MXU pass, f32 accum.
        d1 = jnp.dot(a1_ref[...], b1_ref[...], preferred_element_type=jnp.float32)
        y1, ysc = d1[:, :WCm], d1[:, WCm:]                       # lane-tile aligned split

        # training-mode BN stats for conv1 + shortcut together (stacked folds)
        cs = jnp.concatenate([jnp.sum(y1, axis=0, keepdims=True),
                              jnp.sum(ysc, axis=0, keepdims=True)], axis=0)   # (2, W*C)
        mean = fold(cs) * inv_cnt
        diff1 = y1 - mean[0:1]
        diffsc = ysc - mean[1:2]
        sq = jnp.concatenate([jnp.sum(diff1 * diff1, axis=0, keepdims=True),
                              jnp.sum(diffsc * diffsc, axis=0, keepdims=True)], axis=0)
        var = fold(sq) * inv_cnt                                 # (2, W*C)

        scale1 = bnp[0:1] * lax.rsqrt(var[0:1] + EPS)
        h1 = jnp.maximum(diff1 * scale1 + bnp[1:2], 0.0)         # (NH, W*Cmid), f32
        scalesc = bnp[4:5] * lax.rsqrt(var[1:2] + EPS)
        sc = diffsc * scalesc + bnp[5:6]                         # (NH, W*Cout), f32

        # conv2 (3x3, pad=1): height taps via sublane rolls + image-boundary masks;
        # width padding is already folded into the Toeplitz weights.  One K=3*W*C matmul.
        row = lax.broadcasted_iota(jnp.int32, (NH, 1), 0)
        h_img = row % H
        up = jnp.where(h_img == 0, 0.0,
                       pltpu.roll(h1, shift=1, axis=0))          # tap at h-1
        dn = jnp.where(h_img == H - 1, 0.0,
                       pltpu.roll(h1, shift=NH - 1, axis=0))     # tap at h+1 (roll by -1)
        a2 = jnp.concatenate([up, h1, dn], axis=1).astype(jnp.bfloat16)   # (NH, 3*W*C)
        y2 = jnp.dot(a2, b2_ref[...], preferred_element_type=jnp.float32)  # (NH, W*Cout)

        # BN2 + final ReLU(residual + shortcut)
        m2 = fold(jnp.sum(y2, axis=0, keepdims=True)) * inv_cnt
        diff2 = y2 - m2
        v2 = fold(jnp.sum(diff2 * diff2, axis=0, keepdims=True)) * inv_cnt
        scale2 = bnp[2:3] * lax.rsqrt(v2 + EPS)
        res = diff2 * scale2 + bnp[3:4]

        out_ref[...] = jnp.maximum(res + sc, 0.0)                # dense (N*H, W*Cout) store

    out2d = pl.pallas_call(
        kernel,
        out_shape=jax.ShapeDtypeStruct((NH, WCo), jnp.float32),
        in_specs=[pl.BlockSpec(memory_space=pltpu.MemorySpace.VMEM)] * 4,
        out_specs=pl.BlockSpec(memory_space=pltpu.MemorySpace.VMEM),
    )(a1_bf, b1_bf, b2_bf, bn_rows)

    # (N*H, W*Cout) -> NHWC -> NCHW (cheap XLA-side reshape/transpose)
    return jnp.transpose(out2d.reshape(N, H, W, Cout), (0, 3, 1, 2))


def reference_forward(x_nchw, params):
    """Pure-JAX reference (same math, f32 HIGHEST precision) for a correctness check."""
    w1, g1, b1, w2, g2, b2, wsc, gsc, bsc = params

    def conv3(x, w):
        return lax.conv_general_dilated(
            x, w, window_strides=(1, 1), padding=((1, 1), (1, 1)),
            dimension_numbers=("NHWC", "HWIO", "NHWC"),
            precision=lax.Precision.HIGHEST)

    def bn(x, g, b):
        mean = jnp.mean(x, axis=(0, 1, 2), keepdims=True)
        var = jnp.mean((x - mean) ** 2, axis=(0, 1, 2), keepdims=True)
        return (x - mean) * lax.rsqrt(var + EPS) * g.reshape(1, 1, 1, -1) \
               + b.reshape(1, 1, 1, -1)

    x = jnp.transpose(x_nchw, (0, 2, 3, 1))
    h = jnp.maximum(bn(conv3(x, w1), g1, b1), 0.0)
    res = bn(conv3(h, w2), g2, b2)
    sc = bn(jnp.einsum("nhwc,cd->nhwd", x, wsc,
                       precision=lax.Precision.HIGHEST), gsc, bsc)
    return jnp.transpose(jnp.maximum(res + sc, 0.0), (0, 3, 1, 2))


if __name__ == "__main__":
    key = jax.random.PRNGKey(0)
    ks = [jax.random.fold_in(key, i) for i in range(8)]

    # BasicBlock(ni=4, nf=8, stride=1) -> shortcut = Conv1x1 + BN (ni != nf)
    N, Cin, H, W = 2, 4, 16, 16
    Cmid = Cout = 8

    x = jax.random.normal(ks[0], (N, Cin, H, W), jnp.float32)

    # Synthetic deterministic parameters (conv weights in (kh, kw, Cin, Cout))
    w1 = jax.random.normal(ks[1], (3, 3, Cin, Cmid), jnp.float32) * 0.2
    w2 = jax.random.normal(ks[2], (3, 3, Cmid, Cout), jnp.float32) * 0.2
    wsc = jax.random.normal(ks[3], (Cin, Cout), jnp.float32) * 0.2
    g1 = 1.0 + 0.1 * jax.random.normal(ks[4], (Cmid,), jnp.float32)
    b1 = 0.1 * jax.random.normal(ks[5], (Cmid,), jnp.float32)
    g2 = 1.0 + 0.1 * jax.random.normal(ks[6], (Cout,), jnp.float32)
    b2 = 0.1 * jax.random.normal(ks[7], (Cout,), jnp.float32)
    gsc = jnp.ones((Cout,), jnp.float32)    # PyTorch BN default init
    bsc = jnp.zeros((Cout,), jnp.float32)

    params = (w1, g1, b1, w2, g2, b2, wsc, gsc, bsc)

    out = jax.block_until_ready(basic_block_forward(x, params))
    ref = jax.block_until_ready(reference_forward(x, params))

    assert out.shape == (N, Cout, H, W)
    # bf16 MXU operands vs f32 HIGHEST reference: tolerance loosened slightly.
    np.testing.assert_allclose(np.asarray(out), np.asarray(ref),
                               rtol=3e-2, atol=3e-2)
    print("KERNEL_OK")
</pallas_src>

<mosaic_0001>
module attributes {stable_mosaic.version = 11 : i64} {
  func.func @kernel(%arg0: memref<32x192xbf16, #tpu.memory_space<vmem>>, %arg1: memref<192x256xbf16, #tpu.memory_space<vmem>>, %arg2: memref<384x128xbf16, #tpu.memory_space<vmem>>, %arg3: memref<8x128xf32, #tpu.memory_space<vmem>>, %arg4: memref<32x128xf32, #tpu.memory_space<vmem>>) attributes {dimension_semantics = [], scalar_prefetch = 0 : i64, scratch_operands = 0 : i64, tpu.core_type = #tpu.core_type<tc>} {
    %c0 = arith.constant 0 : index
    %c0_0 = arith.constant 0 : index
    %0 = vector.load %arg3[%c0, %c0_0] : memref<8x128xf32, #tpu.memory_space<vmem>>, vector<8x128xf32>
    %c0_1 = arith.constant 0 : index
    %c0_2 = arith.constant 0 : index
    %1 = vector.load %arg0[%c0_1, %c0_2] : memref<32x192xbf16, #tpu.memory_space<vmem>>, vector<32x192xbf16>
    %c0_3 = arith.constant 0 : index
    %c0_4 = arith.constant 0 : index
    %2 = vector.load %arg1[%c0_3, %c0_4] : memref<192x256xbf16, #tpu.memory_space<vmem>>, vector<192x256xbf16>
    %cst = arith.constant dense<0.000000e+00> : vector<32x256xf32>
    %3 = tpu.matmul %1, %2, %cst {dimension_numbers = #tpu.dot_dimension_numbers<[1], [0], [0], [1], [0, 0, 1, 1], [], []>} : vector<32x192xbf16>, vector<192x256xbf16>, vector<32x256xf32> -> vector<32x256xf32>
    %4 = vector.extract_strided_slice %3 {offsets = [0, 0], sizes = [32, 128], strides = [1, 1]} : vector<32x256xf32> to vector<32x128xf32>
    %5 = vector.extract_strided_slice %3 {offsets = [0, 128], sizes = [32, 128], strides = [1, 1]} : vector<32x256xf32> to vector<32x128xf32>
    %cst_5 = arith.constant dense<0.000000e+00> : vector<128xf32>
    %6 = vector.multi_reduction <add>, %4, %cst_5 [0] : vector<32x128xf32> to vector<128xf32>
    %7 = vector.shape_cast %6 : vector<128xf32> to vector<1x128xf32>
    %cst_6 = arith.constant dense<0.000000e+00> : vector<128xf32>
    %8 = vector.multi_reduction <add>, %5, %cst_6 [0] : vector<32x128xf32> to vector<128xf32>
    %9 = vector.shape_cast %8 : vector<128xf32> to vector<1x128xf32>
    %10 = tpu.concatenate %7, %9 in 0 : vector<1x128xf32>, vector<1x128xf32> -> vector<2x128xf32>
    %c8_i32 = arith.constant 8 : i32
    %11 = tpu.dynamic_rotate %10 by %c8_i32 dim 1 : vector<2x128xf32>, i32 -> vector<2x128xf32>
    %12 = arith.addf %10, %11 : vector<2x128xf32>
    %c16_i32 = arith.constant 16 : i32
    %13 = tpu.dynamic_rotate %12 by %c16_i32 dim 1 : vector<2x128xf32>, i32 -> vector<2x128xf32>
    %14 = arith.addf %12, %13 : vector<2x128xf32>
    %c32_i32 = arith.constant 32 : i32
    %15 = tpu.dynamic_rotate %14 by %c32_i32 dim 1 : vector<2x128xf32>, i32 -> vector<2x128xf32>
    %16 = arith.addf %14, %15 : vector<2x128xf32>
    %c64_i32 = arith.constant 64 : i32
    %17 = tpu.dynamic_rotate %16 by %c64_i32 dim 1 : vector<2x128xf32>, i32 -> vector<2x128xf32>
    %18 = arith.addf %16, %17 : vector<2x128xf32>
    %cst_7 = arith.constant 0.001953125 : f32
    %19 = vector.broadcast %cst_7 : f32 to vector<2x128xf32>
    %20 = arith.mulf %18, %19 : vector<2x128xf32>
    %21 = vector.extract_strided_slice %20 {offsets = [0, 0], sizes = [1, 128], strides = [1, 1]} : vector<2x128xf32> to vector<1x128xf32>
    %22 = vector.broadcast %21 : vector<1x128xf32> to vector<32x128xf32>
    %23 = arith.subf %4, %22 : vector<32x128xf32>
    %24 = vector.extract_strided_slice %20 {offsets = [1, 0], sizes = [1, 128], strides = [1, 1]} : vector<2x128xf32> to vector<1x128xf32>
    %25 = vector.broadcast %24 : vector<1x128xf32> to vector<32x128xf32>
    %26 = arith.subf %5, %25 : vector<32x128xf32>
    %27 = arith.mulf %23, %23 : vector<32x128xf32>
    %cst_8 = arith.constant dense<0.000000e+00> : vector<128xf32>
    %28 = vector.multi_reduction <add>, %27, %cst_8 [0] : vector<32x128xf32> to vector<128xf32>
    %29 = vector.shape_cast %28 : vector<128xf32> to vector<1x128xf32>
    %30 = arith.mulf %26, %26 : vector<32x128xf32>
    %cst_9 = arith.constant dense<0.000000e+00> : vector<128xf32>
    %31 = vector.multi_reduction <add>, %30, %cst_9 [0] : vector<32x128xf32> to vector<128xf32>
    %32 = vector.shape_cast %31 : vector<128xf32> to vector<1x128xf32>
    %33 = tpu.concatenate %29, %32 in 0 : vector<1x128xf32>, vector<1x128xf32> -> vector<2x128xf32>
    %c8_i32_10 = arith.constant 8 : i32
    %34 = tpu.dynamic_rotate %33 by %c8_i32_10 dim 1 : vector<2x128xf32>, i32 -> vector<2x128xf32>
    %35 = arith.addf %33, %34 : vector<2x128xf32>
    %c16_i32_11 = arith.constant 16 : i32
    %36 = tpu.dynamic_rotate %35 by %c16_i32_11 dim 1 : vector<2x128xf32>, i32 -> vector<2x128xf32>
    %37 = arith.addf %35, %36 : vector<2x128xf32>
    %c32_i32_12 = arith.constant 32 : i32
    %38 = tpu.dynamic_rotate %37 by %c32_i32_12 dim 1 : vector<2x128xf32>, i32 -> vector<2x128xf32>
    %39 = arith.addf %37, %38 : vector<2x128xf32>
    %c64_i32_13 = arith.constant 64 : i32
    %40 = tpu.dynamic_rotate %39 by %c64_i32_13 dim 1 : vector<2x128xf32>, i32 -> vector<2x128xf32>
    %41 = arith.addf %39, %40 : vector<2x128xf32>
    %cst_14 = arith.constant 0.001953125 : f32
    %42 = vector.broadcast %cst_14 : f32 to vector<2x128xf32>
    %43 = arith.mulf %41, %42 : vector<2x128xf32>
    %44 = vector.extract_strided_slice %0 {offsets = [0, 0], sizes = [1, 128], strides = [1, 1]} : vector<8x128xf32> to vector<1x128xf32>
    %45 = vector.extract_strided_slice %43 {offsets = [0, 0], sizes = [1, 128], strides = [1, 1]} : vector<2x128xf32> to vector<1x128xf32>
    %cst_15 = arith.constant 9.99999974E-6 : f32
    %46 = vector.broadcast %cst_15 : f32 to vector<1x128xf32>
    %47 = arith.addf %45, %46 : vector<1x128xf32>
    %48 = math.rsqrt %47 : vector<1x128xf32>
    %49 = arith.mulf %44, %48 : vector<1x128xf32>
    %50 = vector.broadcast %49 : vector<1x128xf32> to vector<32x128xf32>
    %51 = arith.mulf %23, %50 : vector<32x128xf32>
    %52 = vector.extract_strided_slice %0 {offsets = [1, 0], sizes = [1, 128], strides = [1, 1]} : vector<8x128xf32> to vector<1x128xf32>
    %53 = vector.broadcast %52 : vector<1x128xf32> to vector<32x128xf32>
    %54 = arith.addf %51, %53 : vector<32x128xf32>
    %cst_16 = arith.constant 0.000000e+00 : f32
    %55 = vector.broadcast %cst_16 : f32 to vector<32x128xf32>
    %56 = arith.maximumf %54, %55 : vector<32x128xf32>
    %57 = vector.extract_strided_slice %0 {offsets = [4, 0], sizes = [1, 128], strides = [1, 1]} : vector<8x128xf32> to vector<1x128xf32>
    %58 = vector.extract_strided_slice %43 {offsets = [1, 0], sizes = [1, 128], strides = [1, 1]} : vector<2x128xf32> to vector<1x128xf32>
    %cst_17 = arith.constant 9.99999974E-6 : f32
    %59 = vector.broadcast %cst_17 : f32 to vector<1x128xf32>
    %60 = arith.addf %58, %59 : vector<1x128xf32>
    %61 = math.rsqrt %60 : vector<1x128xf32>
    %62 = arith.mulf %57, %61 : vector<1x128xf32>
    %63 = vector.broadcast %62 : vector<1x128xf32> to vector<32x128xf32>
    %64 = arith.mulf %26, %63 : vector<32x128xf32>
    %65 = vector.extract_strided_slice %0 {offsets = [5, 0], sizes = [1, 128], strides = [1, 1]} : vector<8x128xf32> to vector<1x128xf32>
    %66 = vector.broadcast %65 : vector<1x128xf32> to vector<32x128xf32>
    %67 = arith.addf %64, %66 : vector<32x128xf32>
    %68 = tpu.iota {dimensions = array<i32: 0>} : vector<32x1xi32>
    %c16_i32_18 = arith.constant 16 : i32
    %c0_i32 = arith.constant 0 : i32
    %69 = arith.cmpi eq, %c16_i32_18, %c0_i32 : i32
    %c1_i32 = arith.constant 1 : i32
    %70 = arith.select %69, %c1_i32, %c16_i32_18 : i32
    %71 = vector.broadcast %70 : i32 to vector<32x1xi32>
    %72 = arith.remsi %68, %71 : vector<32x1xi32>
    %c0_i32_19 = arith.constant 0 : i32
    %73 = vector.broadcast %c0_i32_19 : i32 to vector<32x1xi32>
    %74 = arith.cmpi ne, %72, %73 : vector<32x1xi32>
    %c0_i32_20 = arith.constant 0 : i32
    %75 = vector.broadcast %c0_i32_20 : i32 to vector<32x1xi32>
    %76 = arith.cmpi slt, %72, %75 : vector<32x1xi32>
    %c0_i32_21 = arith.constant 0 : i32
    %77 = arith.cmpi slt, %70, %c0_i32_21 : i32
    %78 = vector.broadcast %77 : i1 to vector<32x1xi1>
    %79 = vector.broadcast %78 : vector<32x1xi1> to vector<32x1xi1>
    %80 = arith.xori %76, %79 : vector<32x1xi1>
    %81 = arith.andi %80, %74 : vector<32x1xi1>
    %82 = vector.broadcast %70 : i32 to vector<32x1xi32>
    %83 = arith.addi %72, %82 : vector<32x1xi32>
    %84 = arith.select %81, %83, %72 : vector<32x1xi1>, vector<32x1xi32>
    %c0_i32_22 = arith.constant 0 : i32
    %85 = vector.broadcast %c0_i32_22 : i32 to vector<32x1xi32>
    %86 = arith.cmpi eq, %84, %85 : vector<32x1xi32>
    %c1_i32_23 = arith.constant 1 : i32
    %87 = tpu.dynamic_rotate %56 by %c1_i32_23 dim 0 : vector<32x128xf32>, i32 -> vector<32x128xf32>
    %cst_24 = arith.constant 0.000000e+00 : f32
    %88 = vector.shape_cast %86 : vector<32x1xi1> to vector<32x1xi1>
    %89 = vector.broadcast %88 : vector<32x1xi1> to vector<32x128xi1>
    %90 = vector.broadcast %cst_24 : f32 to vector<32x128xf32>
    %91 = arith.select %89, %90, %87 : vector<32x128xi1>, vector<32x128xf32>
    %c15_i32 = arith.constant 15 : i32
    %92 = vector.broadcast %c15_i32 : i32 to vector<32x1xi32>
    %93 = arith.cmpi eq, %84, %92 : vector<32x1xi32>
    %c31_i32 = arith.constant 31 : i32
    %94 = tpu.dynamic_rotate %56 by %c31_i32 dim 0 : vector<32x128xf32>, i32 -> vector<32x128xf32>
    %cst_25 = arith.constant 0.000000e+00 : f32
    %95 = vector.shape_cast %93 : vector<32x1xi1> to vector<32x1xi1>
    %96 = vector.broadcast %95 : vector<32x1xi1> to vector<32x128xi1>
    %97 = vector.broadcast %cst_25 : f32 to vector<32x128xf32>
    %98 = arith.select %96, %97, %94 : vector<32x128xi1>, vector<32x128xf32>
    %99 = tpu.concatenate %91, %56, %98 in 1 : vector<32x128xf32>, vector<32x128xf32>, vector<32x128xf32> -> vector<32x384xf32>
    %100 = arith.truncf %99 : vector<32x384xf32> to vector<32x384xbf16>
    %c0_26 = arith.constant 0 : index
    %c0_27 = arith.constant 0 : index
    %101 = vector.load %arg2[%c0_26, %c0_27] : memref<384x128xbf16, #tpu.memory_space<vmem>>, vector<384x128xbf16>
    %cst_28 = arith.constant dense<0.000000e+00> : vector<32x128xf32>
    %102 = tpu.matmul %100, %101, %cst_28 {dimension_numbers = #tpu.dot_dimension_numbers<[1], [0], [0], [1], [0, 0, 1, 1], [], []>} : vector<32x384xbf16>, vector<384x128xbf16>, vector<32x128xf32> -> vector<32x128xf32>
    %cst_29 = arith.constant dense<0.000000e+00> : vector<128xf32>
    %103 = vector.multi_reduction <add>, %102, %cst_29 [0] : vector<32x128xf32> to vector<128xf32>
    %104 = vector.shape_cast %103 : vector<128xf32> to vector<1x128xf32>
    %c8_i32_30 = arith.constant 8 : i32
    %105 = tpu.dynamic_rotate %104 by %c8_i32_30 dim 1 : vector<1x128xf32>, i32 -> vector<1x128xf32>
    %106 = arith.addf %104, %105 : vector<1x128xf32>
    %c16_i32_31 = arith.constant 16 : i32
    %107 = tpu.dynamic_rotate %106 by %c16_i32_31 dim 1 : vector<1x128xf32>, i32 -> vector<1x128xf32>
    %108 = arith.addf %106, %107 : vector<1x128xf32>
    %c32_i32_32 = arith.constant 32 : i32
    %109 = tpu.dynamic_rotate %108 by %c32_i32_32 dim 1 : vector<1x128xf32>, i32 -> vector<1x128xf32>
    %110 = arith.addf %108, %109 : vector<1x128xf32>
    %c64_i32_33 = arith.constant 64 : i32
    %111 = tpu.dynamic_rotate %110 by %c64_i32_33 dim 1 : vector<1x128xf32>, i32 -> vector<1x128xf32>
    %112 = arith.addf %110, %111 : vector<1x128xf32>
    %cst_34 = arith.constant 0.001953125 : f32
    %113 = vector.broadcast %cst_34 : f32 to vector<1x128xf32>
    %114 = arith.mulf %112, %113 : vector<1x128xf32>
    %115 = vector.broadcast %114 : vector<1x128xf32> to vector<32x128xf32>
    %116 = arith.subf %102, %115 : vector<32x128xf32>
    %117 = arith.mulf %116, %116 : vector<32x128xf32>
    %cst_35 = arith.constant dense<0.000000e+00> : vector<128xf32>
    %118 = vector.multi_reduction <add>, %117, %cst_35 [0] : vector<32x128xf32> to vector<128xf32>
    %119 = vector.shape_cast %118 : vector<128xf32> to vector<1x128xf32>
    %c8_i32_36 = arith.constant 8 : i32
    %120 = tpu.dynamic_rotate %119 by %c8_i32_36 dim 1 : vector<1x128xf32>, i32 -> vector<1x128xf32>
    %121 = arith.addf %119, %120 : vector<1x128xf32>
    %c16_i32_37 = arith.constant 16 : i32
    %122 = tpu.dynamic_rotate %121 by %c16_i32_37 dim 1 : vector<1x128xf32>, i32 -> vector<1x128xf32>
    %123 = arith.addf %121, %122 : vector<1x128xf32>
    %c32_i32_38 = arith.constant 32 : i32
    %124 = tpu.dynamic_rotate %123 by %c32_i32_38 dim 1 : vector<1x128xf32>, i32 -> vector<1x128xf32>
    %125 = arith.addf %123, %124 : vector<1x128xf32>
    %c64_i32_39 = arith.constant 64 : i32
    %126 = tpu.dynamic_rotate %125 by %c64_i32_39 dim 1 : vector<1x128xf32>, i32 -> vector<1x128xf32>
    %127 = arith.addf %125, %126 : vector<1x128xf32>
    %cst_40 = arith.constant 0.001953125 : f32
    %128 = vector.broadcast %cst_40 : f32 to vector<1x128xf32>
    %129 = arith.mulf %127, %128 : vector<1x128xf32>
    %130 = vector.extract_strided_slice %0 {offsets = [2, 0], sizes = [1, 128], strides = [1, 1]} : vector<8x128xf32> to vector<1x128xf32>
    %cst_41 = arith.constant 9.99999974E-6 : f32
    %131 = vector.broadcast %cst_41 : f32 to vector<1x128xf32>
    %132 = arith.addf %129, %131 : vector<1x128xf32>
    %133 = math.rsqrt %132 : vector<1x128xf32>
    %134 = arith.mulf %130, %133 : vector<1x128xf32>
    %135 = vector.broadcast %134 : vector<1x128xf32> to vector<32x128xf32>
    %136 = arith.mulf %116, %135 : vector<32x128xf32>
    %137 = vector.extract_strided_slice %0 {offsets = [3, 0], sizes = [1, 128], strides = [1, 1]} : vector<8x128xf32> to vector<1x128xf32>
    %138 = vector.broadcast %137 : vector<1x128xf32> to vector<32x128xf32>
    %139 = arith.addf %136, %138 : vector<32x128xf32>
    %140 = arith.addf %139, %67 : vector<32x128xf32>
    %cst_42 = arith.constant 0.000000e+00 : f32
    %141 = vector.broadcast %cst_42 : f32 to vector<32x128xf32>
    %142 = arith.maximumf %140, %141 : vector<32x128xf32>
    %c0_43 = arith.constant 0 : index
    %c0_44 = arith.constant 0 : index
    %143 = vector.load %arg4[%c0_43, %c0_44] : memref<32x128xf32, #tpu.memory_space<vmem>>, vector<32x128xf32>
    tpu.vector_store %arg4[%c0_43, %c0_44], %142 {strides = array<i32>} : memref<32x128xf32, #tpu.memory_space<vmem>>, vector<32x128xf32>,
    return
  }
}

</mosaic_0001>

<bundles_post_ra>
// kernel: tpu_custom_call.1
= control target key start
LH: loop header
LB: loop body
LE: loop exit
PB: predicated region body
PF: predicated region fallthrough
CT: control target
= control target key end

     0   :  { %9 = vsyncpa [#allocation3], 0  ;;  %s1519_s0 = inlined_call_operand.hbm [shape: bf16[32,192], index: 0, kind: input, shape index: {}]   ;;  %s1520_s1 = inlined_call_operand.hbm [shape: bf16[192,256], index: 1, kind: input, shape index: {}]   ;;  %s1521_s2 = inlined_call_operand.hbm [shape: bf16[384,128], index: 2, kind: input, shape index: {}]   ;;  %s1522_s3 = inlined_call_operand.hbm [shape: f32[8,128], index: 3, kind: input, shape index: {}]   ;;  %s1523_s4 = inlined_call_operand.hbm [shape: f32[32,128], index: 4, kind: output, shape index: {}]  }
   0x1   :  { %10 = vsyncpa [#allocation6], 0 }
   0x2   :  { %11 = vsyncpa [#allocation9], 0 }
   0x3   :  { %12 = vsyncpa [#allocation4], 0  ;;  %s30_s17 = sshll.u32 %s1520_s1, 4  ;;  %s1358_s18 = smov [#allocation5]   ;;  %s31_s17 = int_to_ptr.hbm [resolvable:$true] %s30_s17 }
   0x4   :  { %s32_s19 = sshll.u32 %s1358_s18, 4  ;;  %s17_s22 = sshll.u32 %s1519_s0, 4  ;;  %s33_s19 = int_to_ptr.vmem [resolvable:$true] %s32_s19  ;;  %s18_s22 = int_to_ptr.hbm [resolvable:$true] %s17_s22 }
   0x5   :  { %s1359_s23 = smov 128   ;;  %s1360_s24 = smov 8  }
   0x6   :  { %38 = dma.hbm_to_vmem [thread:$0]  %s31_s17, 3072, %s33_s19, [#allocation6], %s1359_s23, %s1359_s23, %s1360_s24  }
   0x7   :  { %s1361_s25 = smov [#allocation2]   ;;  %s43_s1 = sshll.u32 %s1521_s2, 4  ;;  %s44_s1 = int_to_ptr.hbm [resolvable:$true] %s43_s1 }
   0x8   :  { %s19_s26 = sshll.u32 %s1361_s25, 4  ;;  %s1362_s0 = smov [#allocation7]   ;;  %s20_s26 = int_to_ptr.vmem [resolvable:$true] %s19_s26 }
   0x9   :  { %25 = dma.hbm_to_vmem [thread:$0]  %s18_s22, 512, %s20_s26, [#allocation3], %s1359_s23, %s1359_s23, %s1360_s24  }
   0xa   :  { %s45_s29 = sshll.u32 %s1362_s0, 4  ;;  %s57_s6 = sshll.u32 %s1522_s3, 4  ;;  %s46_s29 = int_to_ptr.vmem [resolvable:$true] %s45_s29  ;;  %s58_s6 = int_to_ptr.hbm [resolvable:$true] %s57_s6 }
   0xb   :  { %s1363_s7 = smov 64   ;;  %s1364_s8 = smov 4  }
   0xc   :  { %51 = dma.hbm_to_vmem [thread:$0]  %s44_s1, 3072, %s46_s29, [#allocation6], %s1363_s7, %s1363_s7, %s1364_s8  }
   0xd   :  { %s1365_s2 = smov [#allocation8]  }
   0xe   :  { %s59_s9 = sshll.u32 %s1365_s2, 4  ;;  %s60_s9 = int_to_ptr.vmem [resolvable:$true] %s59_s9 }
   0xf   :  { %62 = dma.hbm_to_vmem [thread:$0]  %s58_s6, 128, %s60_s9, [#allocation9]  }
  0x10   :  { %1350 = dma.done.wait [#allocation3], 512  }
  0x11   :  { %1351 = vsyncadd [#allocation3], 4294966784 }
  0x12   :  { %1352 = dma.done.wait [#allocation6], 6144  }
  0x13   :  { %1353 = vsyncadd [#allocation6], 4294961152 }
  0x14   :  { %1354 = dma.done.wait [#allocation9], 128  }
  0x15   :  { %1355 = vsyncadd [#allocation9], 4294967168  ;;  %v996_v0 = vld [vmem:[#allocation5 + $0x70] sm:$0xf]  ;;  %v1169_v1 = vld [vmem:[#allocation5 + $0x74] sm:$0xf0] }
  0x16   :  { %v1168_v2 = vld [vmem:[#allocation5 + $0x74] sm:$0xf]  ;;  %v997_v3 = vor.u32 %v1169_v1, %v996_v0  ;;  %v998_v4 = vld [vmem:[#allocation5 + $0x78] sm:$0xf0]  ;;  %v988_v5 = vld [vmem:[#allocation5 + $0x60] sm:$0xf] }
  0x17   :  { %v1167_v6 = vld [vmem:[#allocation5 + $0x64] sm:$0xf0]  ;;  %v1001_v7 = vor.u32 %v1168_v2, %v998_v4  ;;  %v1166_v8 = vld [vmem:[#allocation5 + $0x64] sm:$0xf]  ;;  %v990_v9 = vld [vmem:[#allocation5 + $0x68] sm:$0xf0] }
  0x18   :  { %254 = vmatpush.bf16.msra.mxu0 %v997_v3  ;;  %v989_v10 = vor.u32 %v1167_v6, %v988_v5  ;;  %v980_v11 = vld [vmem:[#allocation5 + $0x50] sm:$0xf]  ;;  %v993_v12 = vor.u32 %v1166_v8, %v990_v9  ;;  %v1165_v13 = vld [vmem:[#allocation5 + $0x54] sm:$0xf0]  ;;  %v1176_v14 = vld [vmem:[#allocation5 + $0xb4] sm:$0xf] }
  0x19   :  { %292 = vmatpush.bf16.msra.mxu2 %v1001_v7  ;;  %v1030_v15 = vld [vmem:[#allocation5 + $0xb8] sm:$0xf0]  ;;  %v1164_v16 = vld [vmem:[#allocation5 + $0x54] sm:$0xf]  ;;  %v1174_v19 = vld [vmem:[#allocation5 + $0xa4] sm:$0xf]  ;;  %v981_v22 = vor.u32 %v1165_v13, %v980_v11 }
  0x1a   :  { %v982_v17 = vld [vmem:[#allocation5 + $0x58] sm:$0xf0]  ;;  %v1033_v18 = vor.u32 %v1176_v14, %v1030_v15  ;;  %v1022_v20 = vld [vmem:[#allocation5 + $0xa8] sm:$0xf0]  ;;  %v1028_v21 = vld [vmem:[#allocation5 + $0xb0] sm:$0xf] }
  0x1b   :  { %v972_v23 = vld [vmem:[#allocation5 + $0x40] sm:$0xf]  ;;  %v1163_v24 = vld [vmem:[#allocation5 + $0x44] sm:$0xf0]  ;;  %v1025_v25 = vor.u32 %v1174_v19, %v1022_v20  ;;  %v1177_v26 = vld [vmem:[#allocation5 + $0xb4] sm:$0xf0]  ;;  %v985_v27 = vor.u32 %v1164_v16, %v982_v17 }
  0x1c   :  { %255 = vmatpush.bf16.msra.mxu0 %v989_v10  ;;  %315 = vmatpush.bf16.msra.mxu3 %v1033_v18  ;;  %v1162_v28 = vld [vmem:[#allocation5 + $0x44] sm:$0xf]  ;;  %v974_v29 = vld [vmem:[#allocation5 + $0x48] sm:$0xf0]  ;;  %v1029_v30 = vor.u32 %v1177_v26, %v1028_v21  ;;  %v1172_v31 = vld [vmem:[#allocation5 + $0x94] sm:$0xf]  ;;  %v973_v36 = vor.u32 %v1163_v24, %v972_v23 }
  0x1d   :  { %293 = vmatpush.bf16.msra.mxu2 %v993_v12  ;;  %v1014_v32 = vld [vmem:[#allocation5 + $0x98] sm:$0xf0]  ;;  %v1020_v33 = vld [vmem:[#allocation5 + $0xa0] sm:$0xf]  ;;  %v1175_v34 = vld [vmem:[#allocation5 + $0xa4] sm:$0xf0]  ;;  %v977_v41 = vor.u32 %v1162_v28, %v974_v29 }
  0x1e   :  { %277 = vmatpush.bf16.msra.mxu1 %v1029_v30  ;;  %v1021_v35 = vor.u32 %v1175_v34, %v1020_v33  ;;  %v964_v37 = vld [vmem:[#allocation5 + $0x30] sm:$0xf]  ;;  %v1161_v38 = vld [vmem:[#allocation5 + $0x34] sm:$0xf0]  ;;  %v1017_v39 = vor.u32 %v1172_v31, %v1014_v32  ;;  %v1170_v40 = vld [vmem:[#allocation5 + $0x84] sm:$0xf] }
  0x1f   :  { %v1006_v42 = vld [vmem:[#allocation5 + $0x88] sm:$0xf0]  ;;  %v1012_v43 = vld [vmem:[#allocation5 + $0x90] sm:$0xf]  ;;  %v1173_v44 = vld [vmem:[#allocation5 + $0x94] sm:$0xf0]  ;;  %v965_v49 = vor.u32 %v1161_v38, %v964_v37 }
  0x20   :  { %256 = vmatpush.bf16.msra.mxu0 %v981_v22  ;;  %316 = vmatpush.bf16.msra.mxu3 %v1025_v25  ;;  %v1160_v45 = vld [vmem:[#allocation5 + $0x34] sm:$0xf]  ;;  %v966_v46 = vld [vmem:[#allocation5 + $0x38] sm:$0xf0]  ;;  %v1013_v47 = vor.u32 %v1173_v44, %v1012_v43  ;;  %v1150_v48 = vld [vmem:[#allocation2 + $0x4] sm:$0xf]  ;;  %v1009_v50 = vor.u32 %v1170_v40, %v1006_v42 }
  0x21   :  { %294 = vmatpush.bf16.msra.mxu2 %v985_v27  ;;  %v926_v51 = vld [vmem:[#allocation2 + $0x8] sm:$0xf0]  ;;  %v1004_v52 = vld [vmem:[#allocation5 + $0x80] sm:$0xf]  ;;  %v1171_v53 = vld [vmem:[#allocation5 + $0x84] sm:$0xf0]  ;;  %v969_v54 = vor.u32 %v1160_v45, %v966_v46 }
  0x22   :  { %278 = vmatpush.bf16.msra.mxu1 %v1021_v35  ;;  %v956_v55 = vld [vmem:[#allocation5 + $0x20] sm:$0xf]  ;;  %v1159_v56 = vld [vmem:[#allocation5 + $0x24] sm:$0xf0]  ;;  %v1158_v57 = vld [vmem:[#allocation5 + $0x24] sm:$0xf]  ;;  %v929_v59 = vor.u32 %v1150_v48, %v926_v51  ;;  %v1005_v60 = vor.u32 %v1171_v53, %v1004_v52 }
  0x23   :  { %v958_v58 = vld [vmem:[#allocation5 + $0x28] sm:$0xf0]  ;;  %v957_v61 = vor.u32 %v1159_v56, %v956_v55  ;;  %vm247_vm0 = vcmask 523264   ;;  %v948_v63 = vld [vmem:[#allocation5 + $0x10] sm:$0xf]  ;;  %vm348_vm1 = vcmask 1040384  }
  0x24   :  { %257 = vmatpush.bf16.msra.mxu0 %v973_v36  ;;  %317 = vmatpush.bf16.msra.mxu3 %v1017_v39  ;;  %v961_v62 = vor.u32 %v1158_v57, %v958_v58  ;;  %v1157_v0 = vld [vmem:[#allocation5 + $0x14] sm:$0xf0]  ;;  %v1156_v1 = vld [vmem:[#allocation5 + $0x14] sm:$0xf]  ;;  %v950_v2 = vld [vmem:[#allocation5 + $0x18] sm:$0xf0] }
  0x25   :  { %295 = vmatpush.bf16.msra.mxu2 %v977_v41  ;;  %v949_v3 = vor.u32 %v1157_v0, %v948_v63  ;;  %v953_v4 = vor.u32 %v1156_v1, %v950_v2  ;;  %v940_v5 = vld [vmem:[#allocation5] sm:$0xf]  ;;  %v1155_v6 = vld [vmem:[#allocation5 + $0x4] sm:$0xf0]  ;;  %v1154_v7 = vld [vmem:[#allocation5 + $0x4] sm:$0xf] }
  0x26   :  { %279 = vmatpush.bf16.msra.mxu1 %v1013_v47  ;;  %v942_v8 = vld [vmem:[#allocation5 + $0x8] sm:$0xf0]  ;;  %v941_v9 = vor.u32 %v1155_v6, %v940_v5  ;;  %v924_v10 = vld [vmem:[#allocation2] sm:$0xf]  ;;  %v1151_v11 = vld [vmem:[#allocation2 + $0x4] sm:$0xf0] }
  0x27   :  { %v945_v12 = vor.u32 %v1154_v7, %v942_v8  ;;  %v925_v13 = vor.u32 %v1151_v11, %v924_v10  ;;  %v1152_v14 = vld [vmem:[#allocation2 + $0x14] sm:$0xf]  ;;  %v934_v15 = vld [vmem:[#allocation2 + $0x18] sm:$0xf0]  ;;  %v932_v17 = vld [vmem:[#allocation2 + $0x10] sm:$0xf] }
  0x28   :  { %258 = vmatpush.bf16.msra.mxu0 %v965_v49  ;;  %318 = vmatpush.bf16.msra.mxu3 %v1009_v50  ;;  %v937_v16 = vor.u32 %v1152_v14, %v934_v15  ;;  %v1153_v18 = vld [vmem:[#allocation2 + $0x14] sm:$0xf0]  ;;  %s1366_s3 = smov 16   ;;  %s1367_s10 = smov 32   ;;  %vm1368_vm10 = vmmov 1  }
  0x29   :  { %296 = vmatpush.bf16.msra.mxu2 %v969_v54  ;;  %v933_v19 = vor.u32 %v1153_v18, %v932_v17  ;;  %s1369_s11 = smov [#allocation10]   ;;  %s907_s15 = sshll.u32 %s1523_s4, 4  ;;  %s908_s15 = int_to_ptr.hbm [resolvable:$true] %s907_s15 }
  0x2a   :  { %280 = vmatpush.bf16.msra.mxu1 %v1005_v60  ;;  %s905_s12 = sshll.u32 %s1369_s11, 4  ;;  %s906_s12 = int_to_ptr.vmem [resolvable:$true] %s905_s12 }
  0x2b   :  { %1036 = vmatmul.msk.bf16.vlgmr.msra.gmra.mxu3 %vm247_vm0, %v929_v59 }
  0x2c   :  { %259 = vmatpush.bf16.msra.mxu0 %v957_v61 }
  0x2d   :  { %297 = vmatpush.bf16.msra.mxu2 %v961_v62  ;;  %1034 = vmatmul.msk.bf16.vlgmr.msra.gmra.mxu1 %vm247_vm0, %v929_v59 }
  0x30   :  { %260 = vmatpush.bf16.msra.mxu0 %v949_v3 }
  0x31   :  { %298 = vmatpush.bf16.msra.mxu2 %v953_v4 }
  0x34   :  { %261 = vmatpush.bf16.msra.mxu0 %v941_v9 }
  0x35   :  { %299 = vmatpush.bf16.msra.mxu2 %v945_v12 }
  0x37   :  { %262 = vmatmul.bf16.vlgmr.msra.gmra.mxu0 %v925_v13 }
  0x38   :  { %300 = vmatmul.bf16.vlgmr.msra.gmra.mxu2 %v925_v13 }
  0x3b   :  { %1037 = vmatmul.msk.bf16.gmra.mxu3 %vm247_vm0, %v937_v16 }
  0x3d   :  { %1035 = vmatmul.msk.bf16.gmra.mxu1 %vm247_vm0, %v937_v16 }
  0x47   :  { %267 = vmatmul.bf16.gmra.mxu0 %v933_v19 }
  0x48   :  { %305 = vmatmul.bf16.gmra.mxu2 %v933_v19 }
  0xaa   :  { %v282_v20 = vpop.f32.mrf.mxu1 }
  0xae   :  { %v320_v22 = vpop.f32.mrf.mxu3 }
  0xb2   :  { %v284_v23 = vpop.f32.mrf.mxu1 }
  0xb4   :  { %v263_v21 = vpop.f32.mrf.mxu0 }
  0xb5   :  { %v283_v31 = vadd.f32 %v282_v20, %v263_v21 }
  0xb6   :  { %v322_v26 = vpop.f32.mrf.mxu3 }
  0xba   :  { %v287_v27 = vpop.f32.mrf.mxu1 }
  0xbb   :  { %v301_v24 = vpop.f32.mrf.mxu2 }
  0xbc   :  { %v265_v25 = vpop.f32.mrf.mxu0  ;;  %v321_v42 = vadd.f32 %v320_v22, %v301_v24 }
  0xbd   :  { %v285_v30 = vadd.f32 %v284_v23, %v265_v25 }
  0xbe   :  { %v325_v32 = vpop.f32.mrf.mxu3 }
  0xbf   :  { %v330_v34 = vadd.f32 %v285_v30, %v283_v31 }
  0xc2   :  { %v289_v36 = vpop.f32.mrf.mxu1 }
  0xc3   :  { %v303_v28 = vpop.f32.mrf.mxu2 }
  0xc4   :  { %v268_v29 = vpop.f32.mrf.mxu0  ;;  %v323_v40 = vadd.f32 %v322_v26, %v303_v28 }
  0xc5   :  { %v288_v33 = vadd.f32 %v287_v27, %v268_v29 }
  0xc6   :  { %v339_v45 = vadd.f32 %v323_v40, %v321_v42  ;;  %v327_v46 = vpop.f32.mrf.mxu3 }
  0xc7   :  { %v331_v38 = vadd.f32 %v330_v34, %v288_v33 }
  0xcb   :  { %v306_v35 = vpop.f32.mrf.mxu2 }
  0xcc   :  { %v270_v37 = vpop.f32.mrf.mxu0  ;;  %v326_v43 = vadd.f32 %v325_v32, %v306_v35 }
  0xcd   :  { %v290_v39 = vadd.f32 %v289_v36, %v270_v37 }
  0xce   :  { %v340_v49 = vadd.f32 %v339_v45, %v326_v43 }
  0xcf   :  { %v332_v41 = vadd.f32 %v331_v38, %v290_v39 }
  0xd1   :  { %v333_v44 = vrot.slane %v332_v41, 4 }
  0xd3   :  { %v334_v47 = vadd.f32 %v333_v44, %v332_v41  ;;  %v308_v48 = vpop.f32.mrf.mxu2 }
  0xd4   :  { %v328_v50 = vadd.f32 %v327_v46, %v308_v48 }
  0xd5   :  { %v335_v51 = vrot.slane %v334_v47, 2 }
  0xd6   :  { %v341_v52 = vadd.f32 %v340_v49, %v328_v50 }
  0xd7   :  { %v336_v54 = vadd.f32 %v335_v51, %v334_v47  ;;  %v1193_v51 = vld [vmem:[#allocation7 + $0x78] sm:$0xff] }
  0xd8   :  { %v342_v53 = vrot.slane %v341_v52, 4  ;;  %773 = vmatpush.bf16.msrb.mxu3 %v1193_v51 }
  0xd9   :  { %v337_v58 = vrot.slane %v336_v54, 1 }
  0xda   :  { %v343_v55 = vadd.f32 %v342_v53, %v341_v52  ;;  %v1185_v52 = vld [vmem:[#allocation7 + $0x38] sm:$0xff] }
  0xdb   :  { %v338_v60 = vadd.f32 %v337_v58, %v336_v54  ;;  %v1201_v53 = vld [vmem:[#allocation7 + $0xb8] sm:$0xff]  ;;  %v1192_v54 = vld [vmem:[#allocation7 + $0x70] sm:$0xff]  ;;  %754 = vmatpush.bf16.msrb.mxu1 %v1185_v52  ;;  %v1183_v58 = vld [vmem:[#allocation7 + $0x28] sm:$0xff] }
  0xdc   :  { %v344_v56 = vrot.slane %v343_v55, 2  ;;  %792 = vmatpush.bf16.msrb.mxu0 %v1201_v53  ;;  %774 = vmatpush.bf16.msrb.mxu3 %v1192_v54 }
  0xdd   :  { %1206 = vmatpush.bf16.msrb.mxu2 %v1201_v53 }
  0xde   :  { %v345_v57 = vadd.f32 %v344_v56, %v343_v55  ;;  %v1184_v55 = vld [vmem:[#allocation7 + $0x30] sm:$0xff] }
  0xdf   :  { %v1200_v56 = vld [vmem:[#allocation7 + $0xb0] sm:$0xff]  ;;  %755 = vmatpush.bf16.msrb.mxu1 %v1184_v55 }
  0xe0   :  { %v346_v59 = vrot.slane %v345_v57, 1  ;;  %793 = vmatpush.bf16.msrb.mxu0 %v1200_v56 }
  0xe1   :  { %1207 = vmatpush.bf16.msrb.mxu2 %v1200_v56 }
  0xe2   :  { %v347_v61 = vadd.f32 %v346_v59, %v345_v57  ;;  %v1191_v57 = vld [vmem:[#allocation7 + $0x68] sm:$0xff] }
  0xe3   :  { %775 = vmatpush.bf16.msrb.mxu3 %v1191_v57  ;;  %v1199_v59 = vld [vmem:[#allocation7 + $0xa8] sm:$0xff]  ;;  %756 = vmatpush.bf16.msrb.mxu1 %v1183_v58 }
  0xe4   :  { %v349_v62 = vsel %vm348_vm1, %v338_v60, %v347_v61  ;;  %v1190_v60 = vld [vmem:[#allocation7 + $0x60] sm:$0xff]  ;;  %794 = vmatpush.bf16.msrb.mxu0 %v1199_v59 }
  0xe5   :  { %350 = vrot.lane.b32.xlu0 %v349_v62, %s1360_s24  ;;  %1208 = vmatpush.bf16.msrb.mxu2 %v1199_v59  ;;  %v1182_v61 = vld [vmem:[#allocation7 + $0x20] sm:$0xff] }
  0xe7   :  { %776 = vmatpush.bf16.msrb.mxu3 %v1190_v60  ;;  %757 = vmatpush.bf16.msrb.mxu1 %v1182_v61 }
 0x157   :  { %v351_v63 = vpop.permute.xlu0 %350 }
 0x158   :  { %v352_v0 = vadd.f32 %v351_v63, %v349_v62  ;;  %v1198_v62 = vld [vmem:[#allocation7 + $0xa0] sm:$0xff]  ;;  %v1189_v63 = vld [vmem:[#allocation7 + $0x58] sm:$0xff] }
 0x159   :  { %795 = vmatpush.bf16.msrb.mxu0 %v1198_v62  ;;  %777 = vmatpush.bf16.msrb.mxu3 %v1189_v63 }
 0x15a   :  { %353 = vrot.lane.b32.xlu0 %v352_v0, %s1366_s3  ;;  %1209 = vmatpush.bf16.msrb.mxu2 %v1198_v62 }
 0x1cc   :  { %v354_v1 = vpop.permute.xlu0 %353 }
 0x1cd   :  { %v355_v2 = vadd.f32 %v354_v1, %v352_v0  ;;  %v1181_v0 = vld [vmem:[#allocation7 + $0x18] sm:$0xff] }
 0x1ce   :  { %v1197_v1 = vld [vmem:[#allocation7 + $0x98] sm:$0xff]  ;;  %758 = vmatpush.bf16.msrb.mxu1 %v1181_v0 }
 0x1cf   :  { %356 = vrot.lane.b32.xlu1 %v355_v2, %s1367_s10  ;;  %796 = vmatpush.bf16.msrb.mxu0 %v1197_v1 }
 0x1d0   :  { %1210 = vmatpush.bf16.msrb.mxu2 %v1197_v1 }
 0x241   :  { %v357_v3 = vpop.permute.xlu1 %356 }
 0x242   :  { %v358_v4 = vadd.f32 %v357_v3, %v355_v2  ;;  %v1188_v2 = vld [vmem:[#allocation7 + $0x50] sm:$0xff] }
 0x243   :  { %778 = vmatpush.bf16.msrb.mxu3 %v1188_v2  ;;  %v1180_v3 = vld [vmem:[#allocation7 + $0x10] sm:$0xff] }
 0x244   :  { %359 = vrot.lane.b32.xlu1 %v358_v4, %s1363_s7  ;;  %759 = vmatpush.bf16.msrb.mxu1 %v1180_v3 }
 0x2b6   :  { %v360_v5 = vpop.permute.xlu1 %359 }
 0x2b7   :  { %v361_v6 = vadd.f32 %v360_v5, %v358_v4  ;;  %v1196_v4 = vld [vmem:[#allocation7 + $0x90] sm:$0xff]  ;;  %v1187_v5 = vld [vmem:[#allocation7 + $0x48] sm:$0xff] }
 0x2b8   :  { %797 = vmatpush.bf16.msrb.mxu0 %v1196_v4  ;;  %779 = vmatpush.bf16.msrb.mxu3 %v1187_v5 }
 0x2b9   :  { %v362_v7 = vmul.f32 0.001953125, %v361_v6  ;;  %v1179_v6 = vld [vmem:[#allocation7 + $0x8] sm:$0xff]  ;;  %1211 = vmatpush.bf16.msrb.mxu2 %v1196_v4 }
 0x2ba   :  { %760 = vmatpush.bf16.msrb.mxu1 %v1179_v6 }
 0x2bb   :  { %v363_v8 = vperm.slane %v362_v7, 0  ;;  %v368_v9 = vperm.slane %v362_v7, 1  ;;  %v1195_v7 = vld [vmem:[#allocation7 + $0x88] sm:$0xff] }
 0x2bc   :  { %798 = vmatpush.bf16.msrb.mxu0 %v1195_v7 }
 0x2bd   :  { %v1424_v10 = vsub.f32 %v283_v31, %v363_v8  ;;  %v1426_v11 = vsub.f32 %v285_v30, %v363_v8  ;;  %v1428_v12 = vsub.f32 %v288_v33, %v363_v8  ;;  %v1430_v13 = vsub.f32 %v321_v42, %v368_v9  ;;  %1212 = vmatpush.bf16.msrb.mxu2 %v1195_v7 }
 0x2be   :  { %v1432_v14 = vsub.f32 %v323_v40, %v368_v9  ;;  %v1434_v15 = vsub.f32 %v326_v43, %v368_v9  ;;  %v1436_v16 = vsub.f32 %v290_v39, %v363_v8  ;;  %v1442_v19 = vsub.f32 %v328_v50, %v368_v9  ;;  %v1186_v8 = vld [vmem:[#allocation7 + $0x40] sm:$0xff] }
 0x2bf   :  { %v373_v17 = vmul.f32 %v1424_v10, %v1424_v10  ;;  %v374_v18 = vmul.f32 %v1426_v11, %v1426_v11  ;;  %v386_v20 = vmul.f32 %v1430_v13, %v1430_v13  ;;  %v375_v22 = vmul.f32 %v1428_v12, %v1428_v12  ;;  %780 = vmatpush.bf16.msrb.mxu3 %v1186_v8 }
 0x2c0   :  { %v387_v21 = vmul.f32 %v1432_v14, %v1432_v14  ;;  %v388_v24 = vmul.f32 %v1434_v15, %v1434_v15  ;;  %v376_v26 = vmul.f32 %v1436_v16, %v1436_v16  ;;  %v389_v28 = vmul.f32 %v1442_v19, %v1442_v19 }
 0x2c1   :  { %v377_v23 = vadd.f32 %v374_v18, %v373_v17  ;;  %v1178_v18 = vld [vmem:[#allocation7] sm:$0xff] }
 0x2c2   :  { %v390_v25 = vadd.f32 %v387_v21, %v386_v20  ;;  %v1194_v21 = vld [vmem:[#allocation7 + $0x80] sm:$0xff]  ;;  %761 = vmatpush.bf16.msrb.mxu1 %v1178_v18 }
 0x2c3   :  { %v378_v27 = vadd.f32 %v377_v23, %v375_v22  ;;  %799 = vmatpush.bf16.msrb.mxu0 %v1194_v21  ;;  %1213 = vmatpush.bf16.msrb.mxu2 %v1194_v21 }
 0x2c4   :  { %v391_v29 = vadd.f32 %v390_v25, %v388_v24 }
 0x2c5   :  { %v379_v30 = vadd.f32 %v378_v27, %v376_v26  ;;  %v453_v27 = vlaneseq }
 0x2c6   :  { %v392_v31 = vadd.f32 %v391_v29, %v389_v28  ;;  %v1461_v29 = vld [vmem:[#allocation8] sm:$0xff] }
 0x2c7   :  { %v380_v32 = vrot.slane %v379_v30, 4 }
 0x2c8   :  { %v393_v33 = vrot.slane %v392_v31, 4 }
 0x2c9   :  { %v381_v34 = vadd.f32 %v380_v32, %v379_v30 }
 0x2ca   :  { %v394_v35 = vadd.f32 %v393_v33, %v392_v31  ;;  %v454_v31 = vshrl.u32 %v453_v27, 7 }
 0x2cb   :  { %v382_v36 = vrot.slane %v381_v34, 2 }
 0x2cc   :  { %v395_v37 = vrot.slane %v394_v35, 2  ;;  %vm514_vm5 = vcmp.lt.s32.totalorder %v454_v31, 1  ;;  %vm539_vm6 = vcmp.lt.s32.totalorder %v454_v31, 7  ;;  %v456_v4 = vadd.s32 16, %v454_v31 }
 0x2cd   :  { %v383_v38 = vadd.f32 %v382_v36, %v381_v34  ;;  %v455_v34 = vadd.s32 8, %v454_v31 }
 0x2ce   :  { %v396_v39 = vadd.f32 %v395_v37, %v394_v35  ;;  %v457_v35 = vadd.s32 24, %v454_v31  ;;  %v430_v37 = vperm.slane %v1461_v29, 1  ;;  %v476_v5 = vand.u32 15, %v456_v4 }
 0x2cf   :  { %v384_v40 = vrot.slane %v383_v38, 1 }
 0x2d0   :  { %v397_v41 = vrot.slane %v396_v39, 1  ;;  %vm1203_vm14 = vcmp.ne.s32.totalorder %v476_v5, 0 }
 0x2d1   :  { %v385_v42 = vadd.f32 %v384_v40, %v383_v38  ;;  %vm1139_vm15 = vmpackc.low %vm1368_vm10, %vm1203_vm14 }
 0x2d2   :  { %v398_v43 = vadd.f32 %v397_v41, %v396_v39 }
 0x2d4   :  { %v399_v44 = vsel %vm348_vm1, %v385_v42, %v398_v43  ;;  %v462_v42 = vand.u32 15, %v454_v31  ;;  %v469_v43 = vand.u32 15, %v455_v34 }
 0x2d5   :  { %400 = vrot.lane.b32.xlu2 %v399_v44, %s1360_s24 }
 0x2d6   :  { %vm1202_vm7 = vcmp.ne.s32.totalorder %v462_v42, 0  ;;  %vm1472_vm8 = vcmp.ne.s32.totalorder %v469_v43, 15 }
 0x2d7   :  { %vm1135_vm11 = vmpackc.low %vm1368_vm10, %vm1202_vm7 }
 0x2d8   :  { %vm1143_vm12 = vmpackc.low %vm1472_vm8, %vm1368_vm10 }
 0x32f   :  { %v401_v45 = vpop.permute.xlu2 %400 }
 0x330   :  { %v402_v46 = vadd.f32 %v401_v45, %v399_v44  ;;  %v483_v44 = vand.u32 15, %v457_v35 }
 0x332   :  { %403 = vrot.lane.b32.xlu2 %v402_v46, %s1366_s3  ;;  %vm1476_vm9 = vcmp.ne.s32.totalorder %v483_v44, 15 }
 0x333   :  { %vm1147_vm13 = vmpackc.low %vm1476_vm9, %vm1368_vm10 }
 0x38c   :  { %v404_v47 = vpop.permute.xlu2 %403 }
 0x38d   :  { %v405_v48 = vadd.f32 %v404_v47, %v402_v46 }
 0x38f   :  { %406 = vrot.lane.b32.xlu0 %v405_v48, %s1367_s10 }
 0x401   :  { %v407_v49 = vpop.permute.xlu0 %406 }
 0x402   :  { %v408_v50 = vadd.f32 %v407_v49, %v405_v48 }
 0x404   :  { %409 = vrot.lane.b32.xlu1 %v408_v50, %s1363_s7 }
 0x476   :  { %v410_v9 = vpop.permute.xlu1 %409 }
 0x477   :  { %v411_v17 = vadd.f32 %v410_v9, %v408_v50 }
 0x479   :  { %v412_v20 = vmul.f32 0.001953125, %v411_v17 }
 0x47b   :  { %v413_v22 = vadd.f32 1e-05, %v412_v20 }
 0x47d   :  { %1226 = vrsqrt.f32 %v413_v22  ;;  %vm420_vm3 = vweird.f32 %v413_v22 }
 0x483   :  { %v1227_v23 = vpop.eup %1226 }
 0x484   :  { %v415_v24 = vmul.f32 %v1227_v23, %v413_v22  ;;  %vm421_vm2 = vweird.f32 %v1227_v23 }
 0x485   :  { %vm422_vm4 = vmor %vm420_vm3, %vm421_vm2 }
 0x486   :  { %v416_v25 = vmul.f32 %v1227_v23, %v415_v24 }
 0x488   :  { %v417_v26 = vmul.f32 0.5, %v416_v25 }
 0x48a   :  { %v418_v28 = vsub.f32 1.5, %v417_v26 }
 0x48c   :  { %v419_v30 = vmul.f32 %v1227_v23, %v418_v28 }
 0x48e   :  { %v1463_v32 = vsel %vm422_vm4, %v1227_v23, %v419_v30 }
 0x48f   :  { %v424_v33 = vmul.f32 %v1463_v32, %v1461_v29 }
 0x491   :  { %v425_v36 = vperm.slane %v424_v33, 0 }
 0x493   :  { %v428_v38 = vmul.f32 %v425_v36, %v1428_v12  ;;  %v429_v39 = vmul.f32 %v425_v36, %v1436_v16  ;;  %v426_v40 = vmul.f32 %v425_v36, %v1424_v10  ;;  %v427_v41 = vmul.f32 %v425_v36, %v1426_v11 }
 0x495   :  { %v431_v45 = vadd.f32 %v430_v37, %v426_v40  ;;  %v434_v46 = vadd.f32 %v430_v37, %v429_v39  ;;  %v433_v47 = vadd.f32 %v430_v37, %v428_v38  ;;  %v432_v48 = vadd.f32 %v430_v37, %v427_v41 }
 0x497   :  { %v435_v49 = vmax.f32 %v431_v45, 0.0  ;;  %v438_v50 = vmax.f32 %v434_v46, 0.0  ;;  %v437_v51 = vmax.f32 %v433_v47, 0.0  ;;  %v436_v52 = vmax.f32 %v432_v48, 0.0 }
 0x499   :  { %v510_v11 = vrot.slane %v435_v49, 7  ;;  %v513_v16 = vrot.slane %v438_v50, 7  ;;  %v535_v53 = vrot.slane %v435_v49, 1  ;;  %v537_v54 = vrot.slane %v437_v51, 1 }
 0x49a   :  { %v557_v55 = vpack.c.bf16 %v436_v52, %v435_v49  ;;  %v511_v56 = vrot.slane %v436_v52, 7  ;;  %v536_v57 = vrot.slane %v436_v52, 1  ;;  %v538_v58 = vrot.slane %v438_v50, 1 }
 0x49b   :  { %v518_v59 = vsel %vm514_vm5, %v513_v16, %v510_v11  ;;  %v512_v6 = vrot.slane %v437_v51, 7  ;;  %v560_v7 = vpack.c.bf16 %v438_v50, %v437_v51 }
 0x49c   :  { %781 = vmatmul.bf16.vlgmr.msrb.gmra.mxu3 %v557_v55  ;;  %v517_v60 = vsel %vm514_vm5, %v510_v11, %v511_v56  ;;  %v541_v61 = vsel %vm539_vm6, %v536_v57, %v537_v54  ;;  %v542_v62 = vsel %vm539_vm6, %v535_v53, %v536_v57  ;;  %v540_v63 = vsel %vm539_vm6, %v537_v54, %v538_v58 }
 0x49d   :  { %v1136_v0 = vpack.c.bf16 %v517_v60, %v518_v59  ;;  %v1144_v1 = vpack.c.bf16 %v541_v61, %v542_v62  ;;  %v543_v2 = vsel %vm539_vm6, %v538_v58, %v535_v53  ;;  %v515_v8 = vsel %vm514_vm5, %v512_v6, %v513_v16 }
 0x49e   :  { %v1148_v3 = vpack.c.bf16 %v543_v2, %v540_v63  ;;  %v516_v9 = vsel %vm514_vm5, %v511_v56, %v512_v6 }
 0x49f   :  { %1137 = vmatmul.msk.bf16.vlgmr.msrb.gmra.mxu1 %vm1135_vm11, %v1136_v0  ;;  %1145 = vmatmul.msk.bf16.vlgmr.msrb.gmra.mxu0 %vm1143_vm12, %v1144_v1  ;;  %v1140_v17 = vpack.c.bf16 %v515_v8, %v516_v9 }
 0x4a0   :  { %1149 = vmatmul.msk.bf16.vlgmr.msrb.gmra.mxu2 %vm1147_vm13, %v1148_v3 }
 0x4ac   :  { %786 = vmatmul.bf16.gmra.mxu3 %v560_v7 }
 0x4af   :  { %1141 = vmatmul.msk.bf16.gmra.mxu1 %vm1139_vm15, %v1140_v17 }
 0x51c   :  { %v763_v18 = vpop.f32.mrf.mxu1  ;;  %v801_v23 = vpop.f32.mrf.mxu0 }
 0x51f   :  { %v782_v20 = vpop.f32.mrf.mxu3 }
 0x520   :  { %v783_v28 = vadd.f32 %v782_v20, %v763_v18 }
 0x522   :  { %v802_v31 = vadd.f32 %v801_v23, %v783_v28 }
 0x523   :  { %v806_v25 = vpop.f32.mrf.mxu2 }
 0x524   :  { %v765_v21 = vpop.f32.mrf.mxu1  ;;  %v803_v33 = vpop.f32.mrf.mxu0 }
 0x527   :  { %v784_v22 = vpop.f32.mrf.mxu3 }
 0x528   :  { %v785_v27 = vadd.f32 %v784_v22, %v765_v21 }
 0x52a   :  { %v804_v34 = vadd.f32 %v803_v33, %v785_v27 }
 0x52b   :  { %v808_v40 = vpop.f32.mrf.mxu2 }
 0x52c   :  { %v768_v24 = vpop.f32.mrf.mxu1  ;;  %v811_v38 = vadd.f32 %v804_v34, %v802_v31 }
 0x52f   :  { %v787_v26 = vpop.f32.mrf.mxu3 }
 0x530   :  { %v788_v30 = vadd.f32 %v787_v26, %v768_v24 }
 0x532   :  { %v807_v35 = vadd.f32 %v806_v25, %v788_v30  ;;  %v440_v30 = vrot.slane %v1463_v32, 5 }
 0x534   :  { %v770_v36 = vpop.f32.mrf.mxu1  ;;  %v812_v41 = vadd.f32 %v811_v38, %v807_v35 }
 0x537   :  { %v789_v37 = vpop.f32.mrf.mxu3 }
 0x538   :  { %v790_v39 = vadd.f32 %v789_v37, %v770_v36 }
 0x53a   :  { %v809_v42 = vadd.f32 %v808_v40, %v790_v39 }
 0x53c   :  { %v813_v43 = vadd.f32 %v812_v41, %v809_v42  ;;  %v448_v41 = vperm.slane %v1461_v29, 5 }
 0x53e   :  { %v814_v44 = vrot.slane %v813_v43, 4 }
 0x540   :  { %v815_v45 = vadd.f32 %v814_v44, %v813_v43 }
 0x542   :  { %v816_v46 = vrot.slane %v815_v45, 2 }
 0x544   :  { %v817_v47 = vadd.f32 %v816_v46, %v815_v45  ;;  %v884_v46 = vperm.slane %v1461_v29, 3 }
 0x546   :  { %v818_v48 = vrot.slane %v817_v47, 1 }
 0x548   :  { %v819_v49 = vadd.f32 %v818_v48, %v817_v47 }
 0x54a   :  { %820 = vrot.lane.b32.xlu2 %v819_v49, %s1360_s24 }
 0x5a4   :  { %v821_v50 = vpop.permute.xlu2 %820 }
 0x5a5   :  { %v822_v51 = vadd.f32 %v821_v50, %v819_v49 }
 0x5a7   :  { %823 = vrot.lane.b32.xlu0 %v822_v51, %s1366_s3 }
 0x619   :  { %v824_v52 = vpop.permute.xlu0 %823 }
 0x61a   :  { %v825_v12 = vadd.f32 %v824_v52, %v822_v51 }
 0x61c   :  { %826 = vrot.lane.b32.xlu1 %v825_v12, %s1367_s10 }
 0x68e   :  { %v827_v10 = vpop.permute.xlu1 %826 }
 0x68f   :  { %v828_v11 = vadd.f32 %v827_v10, %v825_v12 }
 0x691   :  { %829 = vrot.lane.b32.xlu2 %v828_v11, %s1363_s7 }
 0x6eb   :  { %v830_v16 = vpop.permute.xlu2 %829 }
 0x6ec   :  { %v831_v53 = vadd.f32 %v830_v16, %v828_v11 }
 0x6ee   :  { %v832_v54 = vmul.f32 0.001953125, %v831_v53 }
 0x6f0   :  { %v833_v55 = vperm.slane %v832_v54, 0 }
 0x6f2   :  { %v834_v56 = vsub.f32 %v802_v31, %v833_v55  ;;  %v835_v57 = vsub.f32 %v804_v34, %v833_v55  ;;  %v836_v58 = vsub.f32 %v807_v35, %v833_v55  ;;  %v837_v59 = vsub.f32 %v809_v42, %v833_v55 }
 0x6f3   :  { %v442_v31 = vmul.f32 %v440_v30, %v1461_v29 }
 0x6f4   :  { %v838_v60 = vmul.f32 %v834_v56, %v834_v56  ;;  %v839_v61 = vmul.f32 %v835_v57, %v835_v57  ;;  %v840_v62 = vmul.f32 %v836_v58, %v836_v58  ;;  %v841_v0 = vmul.f32 %v837_v59, %v837_v59 }
 0x6f5   :  { %v443_v37 = vperm.slane %v442_v31, 4 }
 0x6f6   :  { %v842_v63 = vadd.f32 %v839_v61, %v838_v60 }
 0x6f7   :  { %v444_v42 = vmul.f32 %v443_v37, %v1430_v13  ;;  %v445_v32 = vmul.f32 %v443_v37, %v1432_v14  ;;  %v446_v43 = vmul.f32 %v443_v37, %v1434_v15  ;;  %v447_v44 = vmul.f32 %v443_v37, %v1442_v19 }
 0x6f8   :  { %v843_v1 = vadd.f32 %v842_v63, %v840_v62 }
 0x6f9   :  { %v449_v51 = vadd.f32 %v448_v41, %v444_v42  ;;  %v450_v52 = vadd.f32 %v448_v41, %v445_v32  ;;  %v451_v12 = vadd.f32 %v448_v41, %v446_v43  ;;  %v452_v10 = vadd.f32 %v448_v41, %v447_v44 }
 0x6fa   :  { %v844_v2 = vadd.f32 %v843_v1, %v841_v0 }
 0x6fc   :  { %v845_v3 = vrot.slane %v844_v2, 4 }
 0x6fe   :  { %v846_v4 = vadd.f32 %v845_v3, %v844_v2 }
 0x700   :  { %v847_v5 = vrot.slane %v846_v4, 2 }
 0x702   :  { %v848_v6 = vadd.f32 %v847_v5, %v846_v4 }
 0x704   :  { %v849_v7 = vrot.slane %v848_v6, 1 }
 0x706   :  { %v850_v8 = vadd.f32 %v849_v7, %v848_v6 }
 0x708   :  { %851 = vrot.lane.b32.xlu0 %v850_v8, %s1360_s24 }
 0x77a   :  { %v852_v9 = vpop.permute.xlu0 %851 }
 0x77b   :  { %v853_v17 = vadd.f32 %v852_v9, %v850_v8 }
 0x77d   :  { %854 = vrot.lane.b32.xlu1 %v853_v17, %s1366_s3 }
 0x7ef   :  { %v855_v18 = vpop.permute.xlu1 %854 }
 0x7f0   :  { %v856_v20 = vadd.f32 %v855_v18, %v853_v17 }
 0x7f2   :  { %857 = vrot.lane.b32.xlu2 %v856_v20, %s1367_s10 }
 0x84c   :  { %v858_v21 = vpop.permute.xlu2 %857 }
 0x84d   :  { %v859_v22 = vadd.f32 %v858_v21, %v856_v20 }
 0x84f   :  { %860 = vrot.lane.b32.xlu0 %v859_v22, %s1363_s7 }
 0x8c1   :  { %v861_v23 = vpop.permute.xlu0 %860 }
 0x8c2   :  { %v862_v24 = vadd.f32 %v861_v23, %v859_v22 }
 0x8c4   :  { %v863_v25 = vmul.f32 0.001953125, %v862_v24 }
 0x8c6   :  { %v864_v26 = vadd.f32 1e-05, %v863_v25 }
 0x8c8   :  { %1228 = vrsqrt.f32 %v864_v26  ;;  %vm871_vm1 = vweird.f32 %v864_v26 }
 0x8ce   :  { %v1229_v27 = vpop.eup %1228 }
 0x8cf   :  { %v866_v28 = vmul.f32 %v1229_v27, %v864_v26  ;;  %vm872_vm0 = vweird.f32 %v1229_v27 }
 0x8d0   :  { %vm873_vm2 = vmor %vm871_vm1, %vm872_vm0 }
 0x8d1   :  { %v867_v33 = vmul.f32 %v1229_v27, %v866_v28 }
 0x8d3   :  { %v868_v34 = vmul.f32 0.5, %v867_v33 }
 0x8d5   :  { %v869_v35 = vsub.f32 1.5, %v868_v34 }
 0x8d7   :  { %v870_v36 = vmul.f32 %v1229_v27, %v869_v35 }
 0x8d9   :  { %v874_v38 = vsel %vm873_vm2, %v1229_v27, %v870_v36 }
 0x8da   :  { %v876_v39 = vrot.slane %v874_v38, 6 }
 0x8dc   :  { %v878_v40 = vmul.f32 %v876_v39, %v1461_v29 }
 0x8de   :  { %v879_v45 = vperm.slane %v878_v40, 2 }
 0x8e0   :  { %v880_v47 = vmul.f32 %v879_v45, %v834_v56  ;;  %v881_v48 = vmul.f32 %v879_v45, %v835_v57  ;;  %v882_v49 = vmul.f32 %v879_v45, %v836_v58  ;;  %v883_v50 = vmul.f32 %v879_v45, %v837_v59 }
 0x8e2   :  { %v885_v11 = vadd.f32 %v884_v46, %v880_v47  ;;  %v886_v16 = vadd.f32 %v884_v46, %v881_v48  ;;  %v887_v13 = vadd.f32 %v884_v46, %v882_v49  ;;  %v888_v53 = vadd.f32 %v884_v46, %v883_v50 }
 0x8e4   :  { %v889_v14 = vadd.f32 %v885_v11, %v449_v51  ;;  %v890_v54 = vadd.f32 %v886_v16, %v450_v52  ;;  %v891_v15 = vadd.f32 %v887_v13, %v451_v12  ;;  %v892_v55 = vadd.f32 %v888_v53, %v452_v10 }
 0x8e6   :  { %v893_v19 = vmax.f32 %v889_v14, 0.0  ;;  %v894_v60 = vmax.f32 %v890_v54, 0.0  ;;  %v895_v61 = vmax.f32 %v891_v15, 0.0  ;;  %v896_v29 = vmax.f32 %v892_v55, 0.0 }
 0x8e8   :  { %897 = vst [vmem:[#allocation10] sm:$0xff] %v893_v19 }
 0x8e9   :  { %898 = vst [vmem:[#allocation10 + $0x8] sm:$0xff] %v894_v60 }
 0x8ea   :  { %899 = vst [vmem:[#allocation10 + $0x10] sm:$0xff] %v895_v61 }
 0x8eb   :  { %900 = vst [vmem:[#allocation10 + $0x18] sm:$0xff] %v896_v29 }
 0x8ec   :  { %913 = dma.vmem_to_hbm [thread:$0]  %s906_s12, 512, %s908_s15, [#allocation4], %s1359_s23, %s1359_s23, %s1360_s24  }
 0x8ed   :  { %1356 = dma.done.wait [#allocation4], 512  }
 0x8ee   :  { %1357 = vsyncadd [#allocation4], 4294966784 }
 0x8ef   :  { %918 = vsyncpa [#allocation3], 1 }
 0x8f0   :  { %919 = vsyncpa [#allocation6], 1 }
 0x8f1   :  { %920 = vsyncpa [#allocation9], 1 }
 0x8f2   :  { %921 = vsyncpa [#allocation4], 1 }

</bundles_post_ra>
